<compile_context>
chip_gen: v5e
topology: v5e:2x2
jax: 0.10.0
libtpu: 0.0.40
codegen_flags: <defaults>
</compile_context>

<pallas_src>
import jax
import jax.numpy as jnp
import numpy as np
from jax import lax
from jax.experimental import pallas as pl
from jax.experimental.pallas import tpu as pltpu


NEG_INF = -1e30  # large finite negative: avoids exp(-inf - (-inf)) NaN paths


def _rel_flash_kernel(xq_ref, xkv_ref, wq_ref, wk_ref, wv_ref, w_ref, o_ref,
                      q_sc, m_sc, l_sc, acc_sc, rel_sc):
    qi = pl.program_id(1)
    ki = pl.program_id(2)
    tile = q_sc.shape[0]        # q-tile == kv-tile size
    head = q_sc.shape[1]        # head_size

    # ---- per-q-tile prologue: project q once, init online-softmax state ----
    @pl.when(ki == 0)
    def _init():
        xq = xq_ref[0].astype(jnp.bfloat16)                        # (tile, C)
        wq = wq_ref[...].astype(jnp.bfloat16)                      # (C, H)
        q = lax.dot_general(xq, wq, (((1,), (0,)), ((), ())),
                            preferred_element_type=jnp.float32)    # (tile, H)
        # fold the 1/sqrt(head_size) scale into q once (both score terms are
        # linear in q, so this is exact and avoids scaling the (T,T) scores).
        q_sc[...] = (q * (head ** -0.5)).astype(jnp.bfloat16)
        m_sc[...] = jnp.full(m_sc.shape, NEG_INF, m_sc.dtype)
        l_sc[...] = jnp.zeros(l_sc.shape, l_sc.dtype)
        acc_sc[...] = jnp.zeros(acc_sc.shape, acc_sc.dtype)

    # ---- main body: only kv tiles on/below the causal diagonal ----
    @pl.when(ki <= qi)
    def _compute():
        xkv = xkv_ref[0].astype(jnp.bfloat16)                      # (tile, C)
        wk = wk_ref[...].astype(jnp.bfloat16)
        wv = wv_ref[...].astype(jnp.bfloat16)
        k = lax.dot_general(xkv, wk, (((1,), (0,)), ((), ())),
                            preferred_element_type=jnp.float32).astype(jnp.bfloat16)
        v = lax.dot_general(xkv, wv, (((1,), (0,)), ((), ())),
                            preferred_element_type=jnp.float32).astype(jnp.bfloat16)
        q = q_sc[...]                                              # (tile, H) bf16

        # content scores q . k^T  (MXU, bf16 in / f32 accum)
        s = lax.dot_general(q, k, (((1,), (1,)), ((), ())),
                            preferred_element_type=jnp.float32)    # (tile, tile)

        # relative-position scores: S_rel[ii, jj] = q[i] . E[i - j]
        # w_ref[0] holds the reversed-E window for this tile diagonal; row ii
        # needs the *static* slice [tile-1-ii : 2*tile-1-ii], contracted on MXU.
        # TODO(synk): for large tiles fuse this unrolled loop into one MXU
        # matmul + strided lane-rotate (Music-Transformer skew).
        w_all = w_ref[0].astype(jnp.bfloat16)                      # (2*tile-1, H)
        for ii in range(tile):
            u0 = tile - 1 - ii
            win = w_all[u0:u0 + tile, :]                           # (tile, H)
            row = lax.dot_general(q[ii:ii + 1, :], win,
                                  (((1,), (1,)), ((), ())),
                                  preferred_element_type=jnp.float32)  # (1, tile)
            rel_sc[ii:ii + 1, :] = row
        s = s + rel_sc[...]

        # causal mask from per-tile iota (all-true on strictly-below-diag tiles)
        row_ids = qi * tile + lax.broadcasted_iota(jnp.int32, s.shape, 0)
        col_ids = ki * tile + lax.broadcasted_iota(jnp.int32, s.shape, 1)
        s = jnp.where(col_ids <= row_ids, s, NEG_INF)

        # online softmax update (f32)
        m_prev = m_sc[...]
        m_new = jnp.maximum(m_prev, jnp.max(s, axis=-1, keepdims=True))
        alpha = jnp.exp(m_prev - m_new)
        p = jnp.exp(s - m_new)
        l_sc[...] = alpha * l_sc[...] + jnp.sum(p, axis=-1, keepdims=True)
        acc_sc[...] = alpha * acc_sc[...] + lax.dot_general(
            p.astype(jnp.bfloat16), v, (((1,), (0,)), ((), ())),
            preferred_element_type=jnp.float32)
        m_sc[...] = m_new

    # ---- epilogue at the last contributing (diagonal) kv tile ----
    @pl.when(ki == qi)
    def _finalize():
        inv_l = pl.reciprocal(l_sc[...], approx=True)              # EUP slot
        o_ref[0] = (acc_sc[...] * inv_l).astype(o_ref.dtype)


def relative_attention_head(x, wq, wk, wv, E, block_size, *, tile=None):
    """x: (B, T, C); wq/wk/wv: (C, H) pre-transposed nn.Linear weights;
    E: (block_size, H) relative-position embedding table."""
    B, T, C = x.shape
    H = wq.shape[1]
    if tile is None:
        tile = min(T, 128)
    assert T % tile == 0, "TODO(synk): pad T to a multiple of the tile size"
    nt = T // tile
    dw = 2 * tile - 1

    # Per-diagonal reversed relative-embedding windows, O(T*H) total (replaces
    # the old O(T^2*H) pre-gathered E_rel):  w_tbl[d, u] = E[(d+1)*tile-1-u],
    # zero where that index is negative (strictly-above-diagonal, masked).
    d_ids = jnp.arange(nt)[:, None]
    u_ids = jnp.arange(dw)[None, :]
    r = (d_ids + 1) * tile - 1 - u_ids                              # (nt, dw)
    w_tbl = jnp.where((r >= 0)[..., None],
                      E[jnp.clip(r, 0, block_size - 1)],
                      0.0).astype(jnp.float32)                      # (nt, dw, H)

    const2 = lambda b, qi, ki: (0, 0)
    grid_spec = pltpu.PrefetchScalarGridSpec(
        num_scalar_prefetch=0,
        grid=(B, nt, nt),
        in_specs=[
            pl.BlockSpec((1, tile, C), lambda b, qi, ki: (b, qi, 0)),  # x (q rows)
            pl.BlockSpec((1, tile, C), lambda b, qi, ki: (b, ki, 0)),  # x (kv rows)
            pl.BlockSpec((C, H), const2),                              # wq resident
            pl.BlockSpec((C, H), const2),                              # wk resident
            pl.BlockSpec((C, H), const2),                              # wv resident
            pl.BlockSpec((1, dw, H),
                         lambda b, qi, ki: (jnp.maximum(qi - ki, 0), 0, 0)),
        ],
        out_specs=pl.BlockSpec((1, tile, H), lambda b, qi, ki: (b, qi, 0)),
        scratch_shapes=[
            pltpu.VMEM((tile, H), jnp.bfloat16),    # q (pre-scaled)
            pltpu.VMEM((tile, 1), jnp.float32),     # m (running max)
            pltpu.VMEM((tile, 1), jnp.float32),     # l (running denom)
            pltpu.VMEM((tile, H), jnp.float32),     # acc
            pltpu.VMEM((tile, tile), jnp.float32),  # relative-score tile
        ],
    )
    return pl.pallas_call(
        _rel_flash_kernel,
        out_shape=jax.ShapeDtypeStruct((B, T, H), jnp.float32),
        grid_spec=grid_spec,
        compiler_params=pltpu.CompilerParams(
            dimension_semantics=("parallel", "parallel", "arbitrary"),
            vmem_limit_bytes=32 * 1024 * 1024),
    )(x, x, wq, wk, wv, w_tbl)


def _reference(x, wq, wk, wv, E, block_size):
    B, T, C = x.shape
    H = wq.shape[1]
    q = x @ wq
    k = x @ wk
    v = x @ wv
    rel = jnp.clip(jnp.arange(T)[:, None] - jnp.arange(T)[None, :],
                   0, block_size - 1)
    e_rel = E[rel]                                    # (T, T, H)
    s_rel = jnp.einsum('bth,tsh->bts', q, e_rel)
    wei = (jnp.einsum('bth,bsh->bts', q, k) + s_rel) * (H ** -0.5)
    mask = jnp.tril(jnp.ones((T, T)))
    wei = jnp.where(mask[None, :, :] == 0, -jnp.inf, wei)
    attn = jax.nn.softmax(wei, axis=-1)
    return jnp.einsum('bts,bsh->bth', attn, v)


if __name__ == "__main__":
    # Small ModelConfig-consistent shapes; tile=8 gives a (2, 2, 2) grid so the
    # off-diagonal kv tiles, causal skipping and the online softmax are all hit.
    B, T = 2, 16
    n_embd, head_size, block_size = 32, 16, 16
    tile = 8

    key = jax.random.PRNGKey(0)
    kx, kq, kk, kv, ke = jax.random.split(key, 5)
    x = jax.random.normal(kx, (B, T, n_embd), jnp.float32)
    wq = jax.random.normal(kq, (n_embd, head_size), jnp.float32) * (n_embd ** -0.5)
    wk = jax.random.normal(kk, (n_embd, head_size), jnp.float32) * (n_embd ** -0.5)
    wv = jax.random.normal(kv, (n_embd, head_size), jnp.float32) * (n_embd ** -0.5)
    E = jax.random.normal(ke, (block_size, head_size), jnp.float32) * 0.5

    out = relative_attention_head(x, wq, wk, wv, E, block_size, tile=tile)
    out = jax.block_until_ready(out)

    ref = jax.block_until_ready(_reference(x, wq, wk, wv, E, block_size))
    # tolerance sized for bf16 MXU operands + approx reciprocal vs f32 reference
    np.testing.assert_allclose(np.asarray(out), np.asarray(ref),
                               rtol=5e-2, atol=5e-2)
    print("KERNEL_OK")
</pallas_src>

<mosaic_0001>
module attributes {stable_mosaic.version = 11 : i64} {
  func.func @_rel_flash_kernel(%arg0: i32, %arg1: i32, %arg2: i32, %arg3: memref<1x8x32xf32, #tpu.memory_space<vmem>>, %arg4: memref<1x8x32xf32, #tpu.memory_space<vmem>>, %arg5: memref<32x16xf32, #tpu.memory_space<vmem>>, %arg6: memref<32x16xf32, #tpu.memory_space<vmem>>, %arg7: memref<32x16xf32, #tpu.memory_space<vmem>>, %arg8: memref<1x15x16xf32, #tpu.memory_space<vmem>>, %arg9: memref<1x8x16xf32, #tpu.memory_space<vmem>>, %arg10: memref<8x16xbf16, #tpu.memory_space<vmem>>, %arg11: memref<8x1xf32, #tpu.memory_space<vmem>>, %arg12: memref<8x1xf32, #tpu.memory_space<vmem>>, %arg13: memref<8x16xf32, #tpu.memory_space<vmem>>, %arg14: memref<8x8xf32, #tpu.memory_space<vmem>>) attributes {dimension_semantics = [#tpu.dimension_semantics<parallel>, #tpu.dimension_semantics<parallel>, #tpu.dimension_semantics<arbitrary>], iteration_bounds = array<i64: 2, 2, 2>, scalar_prefetch = 0 : i64, scratch_operands = 5 : i64, tpu.core_type = #tpu.core_type<tc>, window_params = [{transform_indices = @transform_0, window_bounds = array<i64: 1, 8, 32>}, {transform_indices = @transform_1, window_bounds = array<i64: 1, 8, 32>}, {pipeline_mode = #tpu.pipeline_mode<synchronous>, transform_indices = @transform_2, window_bounds = array<i64: 32, 16>}, {pipeline_mode = #tpu.pipeline_mode<synchronous>, transform_indices = @transform_3, window_bounds = array<i64: 32, 16>}, {pipeline_mode = #tpu.pipeline_mode<synchronous>, transform_indices = @transform_4, window_bounds = array<i64: 32, 16>}, {transform_indices = @transform_5, window_bounds = array<i64: 1, 15, 16>}, {transform_indices = @transform_6, window_bounds = array<i64: 1, 8, 16>}]} {
    %c0_i32 = arith.constant 0 : i32
    %0 = arith.cmpi eq, %arg2, %c0_i32 : i32
    %1 = arith.extui %0 : i1 to i32
    %c0_i32_0 = arith.constant 0 : i32
    %2 = arith.cmpi ne, %1, %c0_i32_0 : i32
    scf.if %2 {
      %c0 = arith.constant 0 : index
      %c0_3 = arith.constant 0 : index
      %c0_4 = arith.constant 0 : index
      %9 = vector.load %arg3[%c0, %c0_3, %c0_4] : memref<1x8x32xf32, #tpu.memory_space<vmem>>, vector<1x8x32xf32>
      %10 = vector.shape_cast %9 : vector<1x8x32xf32> to vector<8x32xf32>
      %11 = arith.truncf %10 : vector<8x32xf32> to vector<8x32xbf16>
      %c0_5 = arith.constant 0 : index
      %c0_6 = arith.constant 0 : index
      %12 = vector.load %arg5[%c0_5, %c0_6] : memref<32x16xf32, #tpu.memory_space<vmem>>, vector<32x16xf32>
      %13 = arith.truncf %12 : vector<32x16xf32> to vector<32x16xbf16>
      %cst = arith.constant dense<0.000000e+00> : vector<8x16xf32>
      %14 = tpu.matmul %11, %13, %cst {dimension_numbers = #tpu.dot_dimension_numbers<[1], [0], [0], [1], [0, 0, 1, 1], [], []>} : vector<8x32xbf16>, vector<32x16xbf16>, vector<8x16xf32> -> vector<8x16xf32>
      %cst_7 = arith.constant 2.500000e-01 : f32
      %15 = vector.broadcast %cst_7 : f32 to vector<8x16xf32>
      %16 = arith.mulf %14, %15 : vector<8x16xf32>
      %17 = arith.truncf %16 : vector<8x16xf32> to vector<8x16xbf16>
      %c0_8 = arith.constant 0 : index
      %c0_9 = arith.constant 0 : index
      %18 = vector.load %arg10[%c0_8, %c0_9] : memref<8x16xbf16, #tpu.memory_space<vmem>>, vector<8x16xbf16>
      tpu.vector_store %arg10[%c0_8, %c0_9], %17 {strides = array<i32>} : memref<8x16xbf16, #tpu.memory_space<vmem>>, vector<8x16xbf16>,
      %cst_10 = arith.constant -1.000000e+30 : f32
      %19 = vector.broadcast %cst_10 : f32 to vector<8x1xf32>
      %c0_11 = arith.constant 0 : index
      %c0_12 = arith.constant 0 : index
      %20 = vector.load %arg11[%c0_11, %c0_12] : memref<8x1xf32, #tpu.memory_space<vmem>>, vector<8x1xf32>
      tpu.vector_store %arg11[%c0_11, %c0_12], %19 {strides = array<i32>} : memref<8x1xf32, #tpu.memory_space<vmem>>, vector<8x1xf32>,
      %cst_13 = arith.constant 0.000000e+00 : f32
      %21 = vector.broadcast %cst_13 : f32 to vector<8x1xf32>
      %c0_14 = arith.constant 0 : index
      %c0_15 = arith.constant 0 : index
      %22 = vector.load %arg12[%c0_14, %c0_15] : memref<8x1xf32, #tpu.memory_space<vmem>>, vector<8x1xf32>
      tpu.vector_store %arg12[%c0_14, %c0_15], %21 {strides = array<i32>} : memref<8x1xf32, #tpu.memory_space<vmem>>, vector<8x1xf32>,
      %cst_16 = arith.constant 0.000000e+00 : f32
      %23 = vector.broadcast %cst_16 : f32 to vector<8x16xf32>
      %c0_17 = arith.constant 0 : index
      %c0_18 = arith.constant 0 : index
      %24 = vector.load %arg13[%c0_17, %c0_18] : memref<8x16xf32, #tpu.memory_space<vmem>>, vector<8x16xf32>
      tpu.vector_store %arg13[%c0_17, %c0_18], %23 {strides = array<i32>} : memref<8x16xf32, #tpu.memory_space<vmem>>, vector<8x16xf32>,
    } else {
    }
    %3 = arith.cmpi sle, %arg2, %arg1 : i32
    %4 = arith.extui %3 : i1 to i32
    %c0_i32_1 = arith.constant 0 : i32
    %5 = arith.cmpi ne, %4, %c0_i32_1 : i32
    scf.if %5 {
      %c0 = arith.constant 0 : index
      %c0_3 = arith.constant 0 : index
      %c0_4 = arith.constant 0 : index
      %9 = vector.load %arg4[%c0, %c0_3, %c0_4] : memref<1x8x32xf32, #tpu.memory_space<vmem>>, vector<1x8x32xf32>
      %10 = vector.shape_cast %9 : vector<1x8x32xf32> to vector<8x32xf32>
      %11 = arith.truncf %10 : vector<8x32xf32> to vector<8x32xbf16>
      %c0_5 = arith.constant 0 : index
      %c0_6 = arith.constant 0 : index
      %12 = vector.load %arg6[%c0_5, %c0_6] : memref<32x16xf32, #tpu.memory_space<vmem>>, vector<32x16xf32>
      %13 = arith.truncf %12 : vector<32x16xf32> to vector<32x16xbf16>
      %c0_7 = arith.constant 0 : index
      %c0_8 = arith.constant 0 : index
      %14 = vector.load %arg7[%c0_7, %c0_8] : memref<32x16xf32, #tpu.memory_space<vmem>>, vector<32x16xf32>
      %15 = arith.truncf %14 : vector<32x16xf32> to vector<32x16xbf16>
      %cst = arith.constant dense<0.000000e+00> : vector<8x16xf32>
      %16 = tpu.matmul %11, %13, %cst {dimension_numbers = #tpu.dot_dimension_numbers<[1], [0], [0], [1], [0, 0, 1, 1], [], []>} : vector<8x32xbf16>, vector<32x16xbf16>, vector<8x16xf32> -> vector<8x16xf32>
      %17 = arith.truncf %16 : vector<8x16xf32> to vector<8x16xbf16>
      %cst_9 = arith.constant dense<0.000000e+00> : vector<8x16xf32>
      %18 = tpu.matmul %11, %15, %cst_9 {dimension_numbers = #tpu.dot_dimension_numbers<[1], [0], [0], [1], [0, 0, 1, 1], [], []>} : vector<8x32xbf16>, vector<32x16xbf16>, vector<8x16xf32> -> vector<8x16xf32>
      %19 = arith.truncf %18 : vector<8x16xf32> to vector<8x16xbf16>
      %c0_10 = arith.constant 0 : index
      %c0_11 = arith.constant 0 : index
      %20 = vector.load %arg10[%c0_10, %c0_11] : memref<8x16xbf16, #tpu.memory_space<vmem>>, vector<8x16xbf16>
      %cst_12 = arith.constant dense<0.000000e+00> : vector<8x8xf32>
      %21 = tpu.matmul %20, %17, %cst_12 {dimension_numbers = #tpu.dot_dimension_numbers<[1], [1], [0], [0], [0, 0, 1, 0], [], []>} : vector<8x16xbf16>, vector<8x16xbf16>, vector<8x8xf32> -> vector<8x8xf32>
      %c0_13 = arith.constant 0 : index
      %c0_14 = arith.constant 0 : index
      %c0_15 = arith.constant 0 : index
      %22 = vector.load %arg8[%c0_13, %c0_14, %c0_15] : memref<1x15x16xf32, #tpu.memory_space<vmem>>, vector<1x15x16xf32>
      %23 = vector.shape_cast %22 : vector<1x15x16xf32> to vector<15x16xf32>
      %24 = arith.truncf %23 : vector<15x16xf32> to vector<15x16xbf16>
      %25 = vector.extract_strided_slice %24 {offsets = [7, 0], sizes = [8, 16], strides = [1, 1]} : vector<15x16xbf16> to vector<8x16xbf16>
      %26 = vector.extract_strided_slice %20 {offsets = [0, 0], sizes = [1, 16], strides = [1, 1]} : vector<8x16xbf16> to vector<1x16xbf16>
      %cst_16 = arith.constant dense<0.000000e+00> : vector<1x8xf32>
      %27 = tpu.matmul %26, %25, %cst_16 {dimension_numbers = #tpu.dot_dimension_numbers<[1], [1], [0], [0], [0, 0, 1, 0], [], []>} : vector<1x16xbf16>, vector<8x16xbf16>, vector<1x8xf32> -> vector<1x8xf32>
      %c0_17 = arith.constant 0 : index
      %c0_18 = arith.constant 0 : index
      %28 = vector.load %arg14[%c0_17, %c0_18] : memref<8x8xf32, #tpu.memory_space<vmem>>, vector<1x8xf32>
      tpu.vector_store %arg14[%c0_17, %c0_18], %27 {strides = array<i32>} : memref<8x8xf32, #tpu.memory_space<vmem>>, vector<1x8xf32>,
      %29 = vector.extract_strided_slice %24 {offsets = [6, 0], sizes = [8, 16], strides = [1, 1]} : vector<15x16xbf16> to vector<8x16xbf16>
      %30 = vector.extract_strided_slice %20 {offsets = [1, 0], sizes = [1, 16], strides = [1, 1]} : vector<8x16xbf16> to vector<1x16xbf16>
      %cst_19 = arith.constant dense<0.000000e+00> : vector<1x8xf32>
      %31 = tpu.matmul %30, %29, %cst_19 {dimension_numbers = #tpu.dot_dimension_numbers<[1], [1], [0], [0], [0, 0, 1, 0], [], []>} : vector<1x16xbf16>, vector<8x16xbf16>, vector<1x8xf32> -> vector<1x8xf32>
      %c1 = arith.constant 1 : index
      %c0_20 = arith.constant 0 : index
      %32 = vector.load %arg14[%c1, %c0_20] : memref<8x8xf32, #tpu.memory_space<vmem>>, vector<1x8xf32>
      tpu.vector_store %arg14[%c1, %c0_20], %31 {strides = array<i32>} : memref<8x8xf32, #tpu.memory_space<vmem>>, vector<1x8xf32>,
      %33 = vector.extract_strided_slice %24 {offsets = [5, 0], sizes = [8, 16], strides = [1, 1]} : vector<15x16xbf16> to vector<8x16xbf16>
      %34 = vector.extract_strided_slice %20 {offsets = [2, 0], sizes = [1, 16], strides = [1, 1]} : vector<8x16xbf16> to vector<1x16xbf16>
      %cst_21 = arith.constant dense<0.000000e+00> : vector<1x8xf32>
      %35 = tpu.matmul %34, %33, %cst_21 {dimension_numbers = #tpu.dot_dimension_numbers<[1], [1], [0], [0], [0, 0, 1, 0], [], []>} : vector<1x16xbf16>, vector<8x16xbf16>, vector<1x8xf32> -> vector<1x8xf32>
      %c2 = arith.constant 2 : index
      %c0_22 = arith.constant 0 : index
      %36 = vector.load %arg14[%c2, %c0_22] : memref<8x8xf32, #tpu.memory_space<vmem>>, vector<1x8xf32>
      tpu.vector_store %arg14[%c2, %c0_22], %35 {strides = array<i32>} : memref<8x8xf32, #tpu.memory_space<vmem>>, vector<1x8xf32>,
      %37 = vector.extract_strided_slice %24 {offsets = [4, 0], sizes = [8, 16], strides = [1, 1]} : vector<15x16xbf16> to vector<8x16xbf16>
      %38 = vector.extract_strided_slice %20 {offsets = [3, 0], sizes = [1, 16], strides = [1, 1]} : vector<8x16xbf16> to vector<1x16xbf16>
      %cst_23 = arith.constant dense<0.000000e+00> : vector<1x8xf32>
      %39 = tpu.matmul %38, %37, %cst_23 {dimension_numbers = #tpu.dot_dimension_numbers<[1], [1], [0], [0], [0, 0, 1, 0], [], []>} : vector<1x16xbf16>, vector<8x16xbf16>, vector<1x8xf32> -> vector<1x8xf32>
      %c3 = arith.constant 3 : index
      %c0_24 = arith.constant 0 : index
      %40 = vector.load %arg14[%c3, %c0_24] : memref<8x8xf32, #tpu.memory_space<vmem>>, vector<1x8xf32>
      tpu.vector_store %arg14[%c3, %c0_24], %39 {strides = array<i32>} : memref<8x8xf32, #tpu.memory_space<vmem>>, vector<1x8xf32>,
      %41 = vector.extract_strided_slice %24 {offsets = [3, 0], sizes = [8, 16], strides = [1, 1]} : vector<15x16xbf16> to vector<8x16xbf16>
      %42 = vector.extract_strided_slice %20 {offsets = [4, 0], sizes = [1, 16], strides = [1, 1]} : vector<8x16xbf16> to vector<1x16xbf16>
      %cst_25 = arith.constant dense<0.000000e+00> : vector<1x8xf32>
      %43 = tpu.matmul %42, %41, %cst_25 {dimension_numbers = #tpu.dot_dimension_numbers<[1], [1], [0], [0], [0, 0, 1, 0], [], []>} : vector<1x16xbf16>, vector<8x16xbf16>, vector<1x8xf32> -> vector<1x8xf32>
      %c4 = arith.constant 4 : index
      %c0_26 = arith.constant 0 : index
      %44 = vector.load %arg14[%c4, %c0_26] : memref<8x8xf32, #tpu.memory_space<vmem>>, vector<1x8xf32>
      tpu.vector_store %arg14[%c4, %c0_26], %43 {strides = array<i32>} : memref<8x8xf32, #tpu.memory_space<vmem>>, vector<1x8xf32>,
      %45 = vector.extract_strided_slice %24 {offsets = [2, 0], sizes = [8, 16], strides = [1, 1]} : vector<15x16xbf16> to vector<8x16xbf16>
      %46 = vector.extract_strided_slice %20 {offsets = [5, 0], sizes = [1, 16], strides = [1, 1]} : vector<8x16xbf16> to vector<1x16xbf16>
      %cst_27 = arith.constant dense<0.000000e+00> : vector<1x8xf32>
      %47 = tpu.matmul %46, %45, %cst_27 {dimension_numbers = #tpu.dot_dimension_numbers<[1], [1], [0], [0], [0, 0, 1, 0], [], []>} : vector<1x16xbf16>, vector<8x16xbf16>, vector<1x8xf32> -> vector<1x8xf32>
      %c5 = arith.constant 5 : index
      %c0_28 = arith.constant 0 : index
      %48 = vector.load %arg14[%c5, %c0_28] : memref<8x8xf32, #tpu.memory_space<vmem>>, vector<1x8xf32>
      tpu.vector_store %arg14[%c5, %c0_28], %47 {strides = array<i32>} : memref<8x8xf32, #tpu.memory_space<vmem>>, vector<1x8xf32>,
      %49 = vector.extract_strided_slice %24 {offsets = [1, 0], sizes = [8, 16], strides = [1, 1]} : vector<15x16xbf16> to vector<8x16xbf16>
      %50 = vector.extract_strided_slice %20 {offsets = [6, 0], sizes = [1, 16], strides = [1, 1]} : vector<8x16xbf16> to vector<1x16xbf16>
      %cst_29 = arith.constant dense<0.000000e+00> : vector<1x8xf32>
      %51 = tpu.matmul %50, %49, %cst_29 {dimension_numbers = #tpu.dot_dimension_numbers<[1], [1], [0], [0], [0, 0, 1, 0], [], []>} : vector<1x16xbf16>, vector<8x16xbf16>, vector<1x8xf32> -> vector<1x8xf32>
      %c6 = arith.constant 6 : index
      %c0_30 = arith.constant 0 : index
      %52 = vector.load %arg14[%c6, %c0_30] : memref<8x8xf32, #tpu.memory_space<vmem>>, vector<1x8xf32>
      tpu.vector_store %arg14[%c6, %c0_30], %51 {strides = array<i32>} : memref<8x8xf32, #tpu.memory_space<vmem>>, vector<1x8xf32>,
      %53 = vector.extract_strided_slice %24 {offsets = [0, 0], sizes = [8, 16], strides = [1, 1]} : vector<15x16xbf16> to vector<8x16xbf16>
      %54 = vector.extract_strided_slice %20 {offsets = [7, 0], sizes = [1, 16], strides = [1, 1]} : vector<8x16xbf16> to vector<1x16xbf16>
      %cst_31 = arith.constant dense<0.000000e+00> : vector<1x8xf32>
      %55 = tpu.matmul %54, %53, %cst_31 {dimension_numbers = #tpu.dot_dimension_numbers<[1], [1], [0], [0], [0, 0, 1, 0], [], []>} : vector<1x16xbf16>, vector<8x16xbf16>, vector<1x8xf32> -> vector<1x8xf32>
      %c7 = arith.constant 7 : index
      %c0_32 = arith.constant 0 : index
      %56 = vector.load %arg14[%c7, %c0_32] : memref<8x8xf32, #tpu.memory_space<vmem>>, vector<1x8xf32>
      tpu.vector_store %arg14[%c7, %c0_32], %55 {strides = array<i32>} : memref<8x8xf32, #tpu.memory_space<vmem>>, vector<1x8xf32>,
      %c0_33 = arith.constant 0 : index
      %c0_34 = arith.constant 0 : index
      %57 = vector.load %arg14[%c0_33, %c0_34] : memref<8x8xf32, #tpu.memory_space<vmem>>, vector<8x8xf32>
      %58 = arith.addf %21, %57 : vector<8x8xf32>
      %c8_i32 = arith.constant 8 : i32
      %59 = arith.muli %arg1, %c8_i32 : i32
      %60 = tpu.iota {dimensions = array<i32: 0>} : vector<8x8xi32>
      %61 = vector.broadcast %59 : i32 to vector<8x8xi32>
      %62 = arith.addi %61, %60 : vector<8x8xi32>
      %c8_i32_35 = arith.constant 8 : i32
      %63 = arith.muli %arg2, %c8_i32_35 : i32
      %64 = tpu.iota {dimensions = array<i32: 1>} : vector<8x8xi32>
      %65 = vector.broadcast %63 : i32 to vector<8x8xi32>
      %66 = arith.addi %65, %64 : vector<8x8xi32>
      %67 = arith.cmpi sle, %66, %62 : vector<8x8xi32>
      %cst_36 = arith.constant -1.000000e+30 : f32
      %68 = vector.broadcast %cst_36 : f32 to vector<8x8xf32>
      %69 = arith.select %67, %58, %68 : vector<8x8xi1>, vector<8x8xf32>
      %c0_37 = arith.constant 0 : index
      %c0_38 = arith.constant 0 : index
      %70 = vector.load %arg11[%c0_37, %c0_38] : memref<8x1xf32, #tpu.memory_space<vmem>>, vector<8x1xf32>
      %cst_39 = arith.constant dense<0xFF800000> : vector<8xf32>
      %71 = vector.multi_reduction <maximumf>, %69, %cst_39 [1] : vector<8x8xf32> to vector<8xf32>
      %72 = vector.shape_cast %71 : vector<8xf32> to vector<8x1xf32>
      %73 = arith.maximumf %70, %72 : vector<8x1xf32>
      %74 = arith.subf %70, %73 : vector<8x1xf32>
      %75 = math.exp %74 : vector<8x1xf32>
      %76 = vector.broadcast %73 : vector<8x1xf32> to vector<8x8xf32>
      %77 = arith.subf %69, %76 : vector<8x8xf32>
      %78 = math.exp %77 : vector<8x8xf32>
      %c0_40 = arith.constant 0 : index
      %c0_41 = arith.constant 0 : index
      %79 = vector.load %arg12[%c0_40, %c0_41] : memref<8x1xf32, #tpu.memory_space<vmem>>, vector<8x1xf32>
      %80 = arith.mulf %75, %79 : vector<8x1xf32>
      %cst_42 = arith.constant dense<0.000000e+00> : vector<8xf32>
      %81 = vector.multi_reduction <add>, %78, %cst_42 [1] : vector<8x8xf32> to vector<8xf32>
      %82 = vector.shape_cast %81 : vector<8xf32> to vector<8x1xf32>
      %83 = arith.addf %80, %82 : vector<8x1xf32>
      %c0_43 = arith.constant 0 : index
      %c0_44 = arith.constant 0 : index
      %84 = vector.load %arg12[%c0_43, %c0_44] : memref<8x1xf32, #tpu.memory_space<vmem>>, vector<8x1xf32>
      tpu.vector_store %arg12[%c0_43, %c0_44], %83 {strides = array<i32>} : memref<8x1xf32, #tpu.memory_space<vmem>>, vector<8x1xf32>,
      %c0_45 = arith.constant 0 : index
      %c0_46 = arith.constant 0 : index
      %85 = vector.load %arg13[%c0_45, %c0_46] : memref<8x16xf32, #tpu.memory_space<vmem>>, vector<8x16xf32>
      %86 = vector.broadcast %75 : vector<8x1xf32> to vector<8x16xf32>
      %87 = arith.mulf %86, %85 : vector<8x16xf32>
      %88 = arith.truncf %78 : vector<8x8xf32> to vector<8x8xbf16>
      %cst_47 = arith.constant dense<0.000000e+00> : vector<8x16xf32>
      %89 = tpu.matmul %88, %19, %cst_47 {dimension_numbers = #tpu.dot_dimension_numbers<[1], [0], [0], [1], [0, 0, 1, 1], [], []>} : vector<8x8xbf16>, vector<8x16xbf16>, vector<8x16xf32> -> vector<8x16xf32>
      %90 = arith.addf %87, %89 : vector<8x16xf32>
      %c0_48 = arith.constant 0 : index
      %c0_49 = arith.constant 0 : index
      %91 = vector.load %arg13[%c0_48, %c0_49] : memref<8x16xf32, #tpu.memory_space<vmem>>, vector<8x16xf32>
      tpu.vector_store %arg13[%c0_48, %c0_49], %90 {strides = array<i32>} : memref<8x16xf32, #tpu.memory_space<vmem>>, vector<8x16xf32>,
      %c0_50 = arith.constant 0 : index
      %c0_51 = arith.constant 0 : index
      %92 = vector.load %arg11[%c0_50, %c0_51] : memref<8x1xf32, #tpu.memory_space<vmem>>, vector<8x1xf32>
      tpu.vector_store %arg11[%c0_50, %c0_51], %73 {strides = array<i32>} : memref<8x1xf32, #tpu.memory_space<vmem>>, vector<8x1xf32>,
    } else {
    }
    %6 = arith.cmpi eq, %arg2, %arg1 : i32
    %7 = arith.extui %6 : i1 to i32
    %c0_i32_2 = arith.constant 0 : i32
    %8 = arith.cmpi ne, %7, %c0_i32_2 : i32
    scf.if %8 {
      %c0 = arith.constant 0 : index
      %c0_3 = arith.constant 0 : index
      %9 = vector.load %arg12[%c0, %c0_3] : memref<8x1xf32, #tpu.memory_space<vmem>>, vector<8x1xf32>
      %10 = tpu.reciprocal %9 {approx = true} : vector<8x1xf32> -> vector<8x1xf32>
      %c0_4 = arith.constant 0 : index
      %c0_5 = arith.constant 0 : index
      %11 = vector.load %arg13[%c0_4, %c0_5] : memref<8x16xf32, #tpu.memory_space<vmem>>, vector<8x16xf32>
      %12 = vector.broadcast %10 : vector<8x1xf32> to vector<8x16xf32>
      %13 = arith.mulf %11, %12 : vector<8x16xf32>
      %c0_6 = arith.constant 0 : index
      %c0_7 = arith.constant 0 : index
      %c0_8 = arith.constant 0 : index
      %14 = vector.load %arg9[%c0_6, %c0_7, %c0_8] : memref<1x8x16xf32, #tpu.memory_space<vmem>>, vector<1x8x16xf32>
      %15 = vector.shape_cast %14 : vector<1x8x16xf32> to vector<8x16xf32>
      %16 = vector.shape_cast %13 : vector<8x16xf32> to vector<1x8x16xf32>
      tpu.vector_store %arg9[%c0_6, %c0_7, %c0_8], %16 {strides = array<i32>} : memref<1x8x16xf32, #tpu.memory_space<vmem>>, vector<1x8x16xf32>,
    } else {
    }
    return
  }
  func.func @transform_0(%arg0: i32, %arg1: i32, %arg2: i32) -> (i32, i32, i32) {
    %c0_i32 = arith.constant 0 : i32
    %c0_i32_0 = arith.constant 0 : i32
    return %arg0, %arg1, %c0_i32 : i32, i32, i32
  }
  func.func @transform_1(%arg0: i32, %arg1: i32, %arg2: i32) -> (i32, i32, i32) {
    %c0_i32 = arith.constant 0 : i32
    %c0_i32_0 = arith.constant 0 : i32
    return %arg0, %arg2, %c0_i32 : i32, i32, i32
  }
  func.func @transform_2(%arg0: i32, %arg1: i32, %arg2: i32) -> (i32, i32) {
    %c0_i32 = arith.constant 0 : i32
    %c0_i32_0 = arith.constant 0 : i32
    %c0_i32_1 = arith.constant 0 : i32
    return %c0_i32, %c0_i32_0 : i32, i32
  }
  func.func @transform_3(%arg0: i32, %arg1: i32, %arg2: i32) -> (i32, i32) {
    %c0_i32 = arith.constant 0 : i32
    %c0_i32_0 = arith.constant 0 : i32
    %c0_i32_1 = arith.constant 0 : i32
    return %c0_i32, %c0_i32_0 : i32, i32
  }
  func.func @transform_4(%arg0: i32, %arg1: i32, %arg2: i32) -> (i32, i32) {
    %c0_i32 = arith.constant 0 : i32
    %c0_i32_0 = arith.constant 0 : i32
    %c0_i32_1 = arith.constant 0 : i32
    return %c0_i32, %c0_i32_0 : i32, i32
  }
  func.func @transform_5(%arg0: i32, %arg1: i32, %arg2: i32) -> (i32, i32, i32) {
    %0 = arith.subi %arg1, %arg2 : i32
    %c0_i32 = arith.constant 0 : i32
    %1 = arith.maxsi %0, %c0_i32 : i32
    %c0_i32_0 = arith.constant 0 : i32
    %c0_i32_1 = arith.constant 0 : i32
    %c0_i32_2 = arith.constant 0 : i32
    return %1, %c0_i32_0, %c0_i32_1 : i32, i32, i32
  }
  func.func @transform_6(%arg0: i32, %arg1: i32, %arg2: i32) -> (i32, i32, i32) {
    %c0_i32 = arith.constant 0 : i32
    %c0_i32_0 = arith.constant 0 : i32
    return %arg0, %arg1, %c0_i32 : i32, i32, i32
  }
}

</mosaic_0001>

<bundles_post_ra>
// kernel: tpu_custom_call.1
= control target key start
LH: loop header
LB: loop body
LE: loop exit
PB: predicated region body
PF: predicated region fallthrough
CT: control target
= control target key end

     0   :  { %11 = vsyncpa [#allocation8], 0  ;;  %s1422_s0 = inlined_call_operand.vmem [shape: f32[2,16,32], index: 0, kind: input, shape index: {}]   ;;  %s1423_s1 = inlined_call_operand.vmem [shape: f32[2,16,32], index: 1, kind: input, shape index: {}]   ;;  %s1424_s2 = inlined_call_operand.vmem [shape: f32[32,16], index: 2, kind: input, shape index: {}]   ;;  %s1425_s3 = inlined_call_operand.vmem [shape: f32[32,16], index: 3, kind: input, shape index: {}]   ;;  %s1426_s4 = inlined_call_operand.vmem [shape: f32[32,16], index: 4, kind: input, shape index: {}]   ;;  %s1427_s5 = inlined_call_operand.vmem [shape: f32[2,15,16], index: 5, kind: input, shape index: {}]   ;;  %s1428_s6 = inlined_call_operand.hbm [shape: f32[2,16,16], index: 6, kind: output, shape index: {}]  }
   0x1   :  { %13 = vsyncpa [#allocation8 + $0x1], 0  ;;  %s1172_s21 = smov 0   ;;  %s1174_s22 = smov 0  }
   0x2   :  { %s1176_s23 = smov 0   ;;  %s1178_s24 = smov 0  }
   0x3   :  { %s1180_s25 = smov 0   ;;  %s1182_s26 = smov 0  }
   0x4   :  { %s1184_s27 = smov 0   ;;  %s1186_s28 = smov 0  }
   0x5   :  { %s1188_s29 = smov 0   ;;  %s1190_s30 = smov 0  }
   0x6 LB: > { %1438 = sst [smem:[#allocation10_spill]] %s1095_s21  ;;  %s878_s7 = sadd.s32 4294967295, %s1131_s30   ;;  %s1131_s30 = sphi %s1190_s30, %s19_s30   ;;  %s1127_s29 = sphi %s1188_s29, %s1460_s29   ;;  %s1123_s28 = sphi %s1186_s28, %s1459_s28   ;;  %s1119_s27 = sphi %s1184_s27, %s1458_s27   ;;  %s1115_s26 = sphi %s1182_s26, %s1457_s26   ;;  %s1111_s25 = sphi %s1180_s25, %s1456_s25   ;;  %s1107_s24 = sphi %s1178_s24, %s1463_s24   ;;  %s1103_s23 = sphi %s1176_s23, %s1454_s23   ;;  %s1099_s22 = sphi %s1174_s22, %s1462_s22   ;;  %s1095_s21 = sphi %s1172_s21, %s1461_s21  }
   0x7   : > { %1439 = sst [smem:[#allocation11_spill]] %s1103_s23  ;;  %s879_s8 = sadd.s32 4294967294, %s1131_s30  }
   0x8   : > { %1440 = sst [smem:[#allocation12_spill]] %s1119_s27  ;;  %s31_s9 = sadd.s32 1, %s1119_s27 }
   0x9   : > { %1441 = sst [smem:[#allocation13_spill]] %s1123_s28  ;;  %p32_p0 = scmp.ge.s32.totalorder %s31_s9, 2 }
   0xa   : > { %1442 = sst [smem:[#allocation14_spill]] %s1127_s29  ;;  %s34_s10 = sadd.s32 1, %s1123_s28 }
   0xb   : > { %s38_s11 = sadd.s32 1, %s1127_s29  ;;  %p208_p1 = scmp.ne.s32.totalorder %s1103_s23, %s1099_s22 }
   0xc   : > { %s1465_s9 = smov (%p32_p0, %s31_s9), 0  ;;  %s1467_s10 = smov (!%p32_p0, %s34_s10), %s1123_s28 }
   0xd   : > { %1443 = sst [smem:[#allocation15_spill]] %s1465_s9  ;;  %p209_p2 = scmp.eq.s32.totalorder %s878_s7, 7 }
   0xe   : > { %p214_p3 = scmp.ne.s32.totalorder %s1099_s22, %s1095_s21  ;;  %p36_p4 = scmp.ge.s32.totalorder %s1467_s10, 2 }
   0xf   : > { %p215_p5 = scmp.eq.s32.totalorder %s879_s8, 7  ;;  %p1234_p6 = por %p209_p2, %p208_p1 }
  0x10   : > { %s1469_s10 = smov (%p36_p4, %s1467_s10), 0  ;;  %s1471_s11 = smov (!%p36_p4, %s38_s11), %s1127_s29 }
  0x11   : > { %1445 = sst [smem:[#allocation16_spill]] %s1469_s10  ;;  %p1241_p7 = por %p215_p5, %p214_p3 }
  0x12   : > { %p882_p8 = scmp.ge.s32.totalorder %s1131_s30, 1  ;;  %p40_p9 = scmp.ge.s32.totalorder %s1471_s11, 2 }
  0x13   : > { %s1446_s13 = scalar_select %p1241_p7, 1, 0 }
  0x14   : > { %p278_p10 = scmp.lt.s32.totalorder %s1131_s30, 9  ;;  %s194_s14 = ssub.s32 %s1123_s28, %s1469_s10 }
  0x15   : > { %1447 = sst [smem:[#allocation17_spill]] %s1446_s13  ;;  %s1473_s11 = smov (%p40_p9, %s1471_s11), 0 }
  0x16   : > { %1448 = sst [smem:[#allocation18_spill]] %s1473_s11  ;;  %p279_p11 = pnand %p882_p8, %p278_p10 }
  0x17   : > { %s193_s15 = ssub.s32 %s1127_s29, %s1473_s11  ;;  %s198_s17 = sadd.s32 1, %s1103_s23 }
  0x18   : > { %s195_s16 = sor.u32 %s194_s14, %s193_s15  ;;  %s1433_s19 = sand.u32 (!%p279_p11), 1, %s1099_s22  }
  0x19   : > { %p196_p12 = scmp.eq.s32.totalorder %s195_s16, 0  ;;  %282 = sbr.rel (%p279_p11) target bundleno = 1015 (0x3f7), region = 44 }
  0x1a   : > { %p327_p13 = scmp.lt.s32.totalorder (!%p279_p11), %s1115_s26, 1  ;;  %s1261_s20 = sshll.u32 (!%p279_p11), %s1433_s19, 3 }
  0x1b   : > { %s1255_s18 = scalar_select %p196_p12, %s1103_s23, %s198_s17  }
  0x1c   : > { %p329_p0 = scmp.lt.s32.totalorder (!%p279_p11), %s1111_s25, 1  ;;  %p337_p1 = scmp.lt.s32.totalorder (!%p279_p11), %s1107_s24, 1 }
  0x1d   : > { %1449 = sst [smem:[#allocation19_spill]] %s1255_s18  ;;  %s343_s15 = ssub.s32 (!%p279_p11), %s1111_s25, %s1107_s24 }
  0x1e   : > { %s328_s7 = scalar_select %p327_p13, %s1115_s26, 1 }
  0x1f   : > { %s330_s8 = scalar_select %p329_p0, %s1111_s25, 1 }
  0x20   : > { %s884_s14 = sshll.u32 %s328_s7, 1  ;;  %p344_p2 = scmp.gt.s32.totalorder %s343_s15, 0 }
  0x21   : > { %s332_s16 = sadd.s32 %s884_s14, %s330_s8  ;;  %p888_p3 = scmp.lt.s32.totalorder %s343_s15, 1 }
  0x22   : > { %s885_s17 = sshll.u32 %s332_s16, 3  ;;  %s1475_s15 = smov (!%p344_p2, %s343_s15), 0 }
  0x23   : > { %s334_s9 = scalar_lea.vmem %s1422_s0, %s885_s17  ;;  %s1477_s15 = smov (!%p888_p3, %s1475_s15), 1 }
  0x24   : > { %s338_s29 = scalar_select %p337_p1, %s1107_s24, 1 }
  0x25   : > { %s920_s7 = sshll.u32 %s1477_s15, 4  ;;  %s326_s21 = scalar_lea.vmem [#allocation7], %s1261_s20 }
  0x26   : > { %s340_s28 = sadd.s32 %s884_s14, %s338_s29  ;;  %s1281_s16 = scalar_lea.vmem %s1427_s5, %s920_s7 }
  0x27   : > { %s887_s19 = sshll.u32 %s340_s28, 3  ;;  %p895_p4 = scmp.ne.s32.totalorder %s1107_s24, 0 }
  0x28   : > { %s1276_s23 = scalar_lea.vmem %s1423_s1, %s887_s19 }
  0x29   : > { %358 = sbr.rel (%p895_p4) target bundleno = 190 (0xbe), region = 48 }
  0x2e   : > { %v363_v0 = vld [vmem:[%s1424_s2 + $0x10] sm:$0xff]  ;;  %v364_v1 = vld [vmem:[%s1424_s2 + $0x18] sm:$0xff]  ;;  %v361_v2 = vld [vmem:[%s1424_s2] sm:$0xff]  ;;  %vm367_vm0 = vcmask 261120   ;;  %vm388_vm1 = vcmask 7168   ;;  %vm391_vm2 = vcmask 130048  }
  0x2f   : > { %v366_v3 = vpack.c.bf16 %v364_v1, %v363_v0  ;;  %v362_v4 = vld [vmem:[%s1424_s2 + $0x8] sm:$0xff]  ;;  %v359_v6 = vld [vmem:[%s334_s9] sm:$0xff]  ;;  %v1133_v8 = vmov -1e+30   ;;  %v1134_v9 = vmov 0.0   ;;  %vm386_vm3 = vcmask 125952  }
  0x30   : > { %v365_v5 = vpack.c.bf16 %v362_v4, %v361_v2  ;;  %v360_v7 = vpack.c.bf16 %v359_v6, %v359_v6  ;;  %389 = vst.msk [vmem:[#allocation3] sm:$0xff] %vm388_vm1, %v1133_v8 }
  0x31   : > { %377 = vmatpush.bf16.msra.mxu0 %v366_v3  ;;  %390 = vst.msk [vmem:[#allocation4] sm:$0xff] %vm388_vm1, %v1134_v9 }
  0x32   : > { %392 = vst.msk [vmem:[#allocation5] sm:$0xff] %vm391_vm2, %v1134_v9 }
  0x35   : > { %378 = vmatpush.bf16.msra.mxu0 %v365_v5 }
  0x38   : > { %896 = vmatmul.msk.bf16.vlgmr.msra.gmra.mxu0 %vm367_vm0, %v360_v7 }
  0xb5   : > { %v380_v10 = vpop.f32.mrf.mxu0 }
  0xb6   : > { %v384_v11 = vmul.f32 0.25, %v380_v10 }
  0xb8   : > { %v385_v12 = vpack.c.bf16 %v384_v11, %v384_v11 }
  0xba   : > { %387 = vst.msk [vmem:[#allocation2] sm:$0xf] %vm386_vm3, %v385_v12 }
  0xbd   : > { %v382_v13 = vpop.f32.mrf.mxu0 }
  0xbe PF: > { %p897_p5 = scmp.gt.s32.totalorder %s1107_s24, %s1111_s25 }
  0xc0   : > { %396 = sbr.rel (%p897_p5) target bundleno = 865 (0x361), region = 52 }
  0xc5   : > { %v401_v14 = vld [vmem:[%s1425_s3 + $0x10] sm:$0xff]  ;;  %v402_v15 = vld [vmem:[%s1425_s3 + $0x18] sm:$0xff]  ;;  %v399_v16 = vld [vmem:[%s1425_s3] sm:$0xff]  ;;  %vm411_vm4 = vcmask 261120   ;;  %vm461_vm5 = vcmask 130048   ;;  %vm711_vm6 = vcmask 1043456  }
  0xc6   : > { %v404_v17 = vpack.c.bf16 %v402_v15, %v401_v14  ;;  %v400_v18 = vld [vmem:[%s1425_s3 + $0x8] sm:$0xff]  ;;  %v407_v19 = vld [vmem:[%s1426_s4 + $0x10] sm:$0xff]  ;;  %v408_v20 = vld [vmem:[%s1426_s4 + $0x18] sm:$0xff]  ;;  %vm481_vm7 = vcmask 57344   ;;  %vm676_vm9 = vcmask 64512   ;;  %vm698_vm10 = vcmask 7168  }
  0xc7   : > { %v405_v21 = vld [vmem:[%s1426_s4] sm:$0xff]  ;;  %v406_v22 = vld [vmem:[%s1426_s4 + $0x8] sm:$0xff]  ;;  %v403_v23 = vpack.c.bf16 %v400_v18, %v399_v16  ;;  %v410_v25 = vpack.c.bf16 %v408_v20, %v407_v19 }
  0xc8   : > { %421 = vmatpush.bf16.msra.mxu0 %v404_v17  ;;  %v397_v24 = vld [vmem:[%s1276_s23] sm:$0xff]  ;;  %v445_v27 = vld [vmem:[%s1281_s16 + $0x8] sm:$0x7f]  ;;  %v409_v31 = vpack.c.bf16 %v406_v22, %v405_v21  ;;  %s909_s23 = sshll.u32 %s1111_s25, 3 }
  0xc9   : > { %v444_v26 = vld [vmem:[%s1281_s16] sm:$0xff]  ;;  %v447_v29 = vpack.c.bf16 %v445_v27, %v445_v27  ;;  %435 = vmatpush.bf16.msra.mxu1 %v410_v25  ;;  %v398_v32 = vpack.c.bf16 %v397_v24, %v397_v24  ;;  %s910_s16 = sshll.u32 %s1107_s24, 3 }
  0xca   : > { %v446_v28 = vpack.c.bf16 %v444_v26, %v444_v26  ;;  %v1326_v30 = vld [vmem:[#allocation2] sm:$0xf] }
  0xcb   : > { %v451_v34 = vunpack.c.l.b16 %v447_v29  ;;  %v484_v35 = vunpack.c.l.b16 %v1326_v30  ;;  %v664_v29 = vlaneseq }
  0xcc   : > { %v450_v33 = vunpack.c.l.b16 %v446_v28  ;;  %422 = vmatpush.bf16.msra.mxu0 %v403_v23  ;;  %v630_v43 = vsel %vm461_vm5, %v446_v28, 0 }
  0xcd   : > { %436 = vmatpush.bf16.msra.mxu1 %v409_v31  ;;  %v485_v41 = vpack.c.b16 %v484_v35, %v484_v35  ;;  %v670_v31 = vand.u32 127, %v664_v29 }
  0xce   : > { %v452_v36 = vpack.c.b16 %v451_v34, %v450_v33  ;;  %v671_v33 = vstv %s910_s16 }
  0xcf   : > { %898 = vmatmul.msk.bf16.vlgmr.msra.gmra.mxu0 %vm411_vm4, %v398_v32  ;;  %v487_v58 = vshrl.u32 %v485_v41, 16  ;;  %v510_v63 = vrot.slane %v485_v41, 1  ;;  %v556_v2 = vrot.slane %v485_v41, 2  ;;  %v602_v3 = vrot.slane %v485_v41, 3 }
  0xd0   : > { %v454_v37 = vshrl.u32 %v452_v36, 16  ;;  %v457_v38 = vshll.u32 %v452_v36, 16  ;;  %v489_v39 = vrot.slane %v452_v36, 3  ;;  %v535_v40 = vrot.slane %v452_v36, 2  ;;  %899 = vmatmul.msk.bf16.vlgmr.msra.gmra.mxu1 %vm411_vm4, %v398_v32 }
  0xd1   : > { %v581_v42 = vrot.slane %v452_v36, 1  ;;  %v534_v0 = vrot.slane %v487_v58, 1  ;;  %v580_v1 = vrot.slane %v487_v58, 2  ;;  %v625_v4 = vrot.slane %v487_v58, 3 }
  0xd2   : > { %v456_v44 = vrot.slane %v454_v37, 3  ;;  %v459_v45 = vrot.slane %v457_v38, 4  ;;  %v494_v46 = vsel %vm461_vm5, %v489_v39, 0  ;;  %v511_v47 = vrot.slane %v454_v37, 2 }
  0xd3   : > { %503 = vmatpush.bf16.xpose.msra.mxu3 %v494_v46  ;;  %v512_v48 = vrot.slane %v457_v38, 3  ;;  %v540_v49 = vsel %vm461_vm5, %v535_v40, 0  ;;  %v557_v50 = vrot.slane %v454_v37, 1  ;;  %v558_v51 = vrot.slane %v457_v38, 2 }
  0xd4   : > { %v460_v52 = vor.u32 %v459_v45, %v456_v44  ;;  %549 = vmatpush.bf16.xpose.msrb.mxu1 %v540_v49  ;;  %v586_v53 = vsel %vm461_vm5, %v581_v42, 0  ;;  %v603_v54 = vrot.slane %v457_v38, 1  ;;  %v666_v32 = vstv %s909_s23 }
  0xd5   : > { %v513_v55 = vor.u32 %v512_v48, %v511_v47  ;;  %v559_v56 = vor.u32 %v558_v51, %v557_v50  ;;  %v672_v35 = vadd.s32 %v671_v33, %v670_v31  ;;  %v1135_v42 = vmov 0  }
  0xd6   : > { %v466_v57 = vsel %vm461_vm5, %v460_v52, 0  ;;  %v604_v59 = vor.u32 %v603_v54, %v454_v37  ;;  %1012 = vset.pattern.permute.xlu0 %v1135_v42  ;;  %1013 = vset.pattern.permute.xlu1 %v1135_v42 }
  0xd7   : > { %475 = vmatpush.bf16.xpose.msra.mxu2 %v466_v57  ;;  %v518_v60 = vsel %vm461_vm5, %v513_v55, 0  ;;  %v564_v61 = vsel %vm461_vm5, %v559_v56, 0  ;;  %v692_v56 = vld [vmem:[#allocation4] sm:$0xff] }
  0xd8   : > { %527 = vmatpush.bf16.xpose.msrb.mxu0 %v518_v60  ;;  %v609_v62 = vsel %vm461_vm5, %v604_v59, 0  ;;  %v700_v60 = vld [vmem:[#allocation5] sm:$0xff] }
  0xda   : > { %901 = vmatmul.msk.bf16.vlgmr.msra.gmra.mxu3 %vm461_vm5, %v487_v58 }
  0xdb   : > { %595 = vmatpush.bf16.xpose.msrb.mxu3 %v586_v53 }
  0xdc   : > { %639 = vmatpush.bf16.xpose.msra.mxu1 %v630_v43  ;;  %v675_v43 = vld [vmem:[#allocation3] sm:$0xff] }
  0xde   : > { %900 = vmatmul.msk.bf16.vlgmr.msra.gmra.mxu2 %vm461_vm5, %v1326_v30 }
  0xdf   : > { %573 = vmatpush.bf16.xpose.msrb.mxu2 %v564_v61  ;;  %902 = vmatmul.msk.bf16.vlgmr.msrb.gmra.mxu0 %vm461_vm5, %v510_v63 }
  0xe0   : > { %618 = vmatpush.bf16.xpose.msra.mxu0 %v609_v62  ;;  %903 = vmatmul.msk.bf16.vlgmr.msrb.gmra.mxu1 %vm461_vm5, %v534_v0 }
  0xea   : > { %905 = vmatmul.msk.bf16.vlgmr.msrb.gmra.mxu3 %vm461_vm5, %v580_v1 }
  0xee   : > { %904 = vmatmul.msk.bf16.vlgmr.msrb.gmra.mxu2 %vm461_vm5, %v556_v2 }
  0xef   : > { %906 = vmatmul.msk.bf16.vlgmr.msra.gmra.mxu0 %vm461_vm5, %v602_v3 }
  0xf0   : > { %907 = vmatmul.msk.bf16.vlgmr.msra.gmra.mxu1 %vm461_vm5, %v625_v4 }
 0x14c   : > { %v424_v5 = vpop.f32.mrf.mxu0 }
 0x14d   : > { %v428_v6 = vpack.c.bf16 %v424_v5, %v424_v5  ;;  %v438_v7 = vpop.f32.mrf.mxu1 }
 0x14e   : > { %v442_v9 = vpack.c.bf16 %v438_v7, %v438_v7 }
 0x14f   : > { %v648_v8 = vsel %vm461_vm5, %v428_v6, 0 }
 0x150   : > { %657 = vmatpush.bf16.xpose.msra.mxu2 %v648_v8  ;;  %v713_v10 = vsel %vm711_vm6, %v442_v9, 0 }
 0x151   : > { %722 = vmatpush.bf16.msra.mxu3 %v713_v10 }
 0x154   : > { %v426_v11 = vpop.f32.mrf.mxu0 }
 0x155   : > { %v440_v12 = vpop.f32.mrf.mxu1 }
 0x157   : > { %908 = vmatmul.msk.bf16.vlgmr.msra.gmra.mxu2 %vm461_vm5, %v1326_v30  ;;  %v665_v30 = vshrl.u32 %v664_v29, 7 }
 0x159   : > { %v667_v34 = vadd.s32 %v666_v32, %v665_v30 }
 0x15b   : > { %vm673_vm8 = vcmp.le.s32.totalorder %v672_v35, %v667_v34 }
 0x15c   : > { %v529_v14 = vpop.f32.mrf.mxu0 }
 0x15d   : > { %v505_v13 = vpop.f32.mrf.mxu3  ;;  %533 = vst.msk [vmem:[#allocation6 + $0x2] sm:$0x1] %vm481_vm7, %v529_v14  ;;  %v551_v15 = vpop.f32.mrf.mxu1 }
 0x15e   : > { %509 = vst.msk [vmem:[#allocation6 + $0x1] sm:$0x1] %vm481_vm7, %v505_v13 }
 0x15f   : > { %555 = vst.msk [vmem:[#allocation6 + $0x3] sm:$0x1] %vm481_vm7, %v551_v15 }
 0x161   : > { %v477_v16 = vpop.f32.mrf.mxu2 }
 0x162   : > { %482 = vst.msk [vmem:[#allocation6] sm:$0x1] %vm481_vm7, %v477_v16 }
 0x164   : > { %v531_v18 = vpop.f32.mrf.mxu0 }
 0x165   : > { %v507_v17 = vpop.f32.mrf.mxu3  ;;  %v553_v19 = vpop.f32.mrf.mxu1 }
 0x169   : > { %v479_v20 = vpop.f32.mrf.mxu2 }
 0x16c   : > { %v620_v22 = vpop.f32.mrf.mxu0 }
 0x16d   : > { %v597_v21 = vpop.f32.mrf.mxu3  ;;  %624 = vst.msk [vmem:[#allocation6 + $0x6] sm:$0x1] %vm481_vm7, %v620_v22  ;;  %v641_v23 = vpop.f32.mrf.mxu1 }
 0x16e   : > { %601 = vst.msk [vmem:[#allocation6 + $0x5] sm:$0x1] %vm481_vm7, %v597_v21 }
 0x16f   : > { %645 = vst.msk [vmem:[#allocation6 + $0x7] sm:$0x1] %vm481_vm7, %v641_v23 }
 0x171   : > { %v575_v24 = vpop.f32.mrf.mxu2 }
 0x172   : > { %579 = vst.msk [vmem:[#allocation6 + $0x4] sm:$0x1] %vm481_vm7, %v575_v24 }
 0x174   : > { %v622_v26 = vpop.f32.mrf.mxu0 }
 0x175   : > { %v599_v25 = vpop.f32.mrf.mxu3  ;;  %v643_v27 = vpop.f32.mrf.mxu1 }
 0x179   : > { %v577_v28 = vpop.f32.mrf.mxu2  ;;  %v646_v36 = vld [vmem:[#allocation6] sm:$0xff] }
 0x1da   : > { %v659_v37 = vpop.f32.mrf.mxu2 }
 0x1db   : > { %v660_v38 = vadd.f32 %v659_v37, %v646_v36 }
 0x1dd   : > { %v674_v39 = vsel %vm673_vm8, %v660_v38, -1e+30 }
 0x1de   : > { %v677_v40 = vsel %vm676_vm9, %v674_v39, -inf }
 0x1df   : > { %678 = vmax.xlane.f32.xlu0 %v677_v40 }
 0x1e2   : > { %v661_v41 = vpop.f32.mrf.mxu2 }
 0x252   : > { %v679_v44 = vpop.xlane.xlu0 %678 }
 0x253   : > { %v680_v45 = vmax.f32 %v675_v43, %v679_v44 }
 0x255   : > { %v681_v46 = vsub.f32 %v675_v43, %v680_v45  ;;  %730 = vst.msk [vmem:[#allocation3] sm:$0xff] %vm698_vm10, %v680_v45  ;;  %686 = vperm.xlu0 %1012, %v680_v45  }
 0x257   : > { %v682_v47 = vmul.f32 1.442695, %v681_v46 }
 0x259   : > { %1014 = vpow2.f32 %v682_v47 }
 0x25f   : > { %v1015_v48 = vpop.eup %1014 }
 0x260   : > { %703 = vperm.xlu1 %1013, %v1015_v48   ;;  %v693_v57 = vmul.f32 %v1015_v48, %v692_v56 }
 0x2c7   : > { %v687_v49 = vpop.permute.xlu0 %686 }
 0x2c8   : > { %v689_v50 = vsub.f32 %v674_v39, %v687_v49 }
 0x2ca   : > { %v690_v51 = vmul.f32 1.442695, %v689_v50 }
 0x2cc   : > { %1016 = vpow2.f32 %v690_v51 }
 0x2d2   : > { %v1017_v52 = vpop.eup %1016  ;;  %v704_v55 = vpop.permute.xlu1 %703 }
 0x2d3   : > { %v707_v53 = vpack.c.bf16 %v1017_v52, %v1017_v52  ;;  %v694_v54 = vsel %vm676_vm9, %v1017_v52, 0.0  ;;  %v706_v61 = vmul.f32 %v704_v55, %v700_v60 }
 0x2d4   : > { %695 = vadd.xlane.f32.xlu1 %v694_v54 }
 0x2d5   : > { %911 = vmatmul.msk.bf16.vlgmr.msra.gmra.mxu3 %vm676_vm9, %v707_v53 }
 0x347   : > { %v696_v58 = vpop.xlane.xlu1 %695 }
 0x348   : > { %v697_v59 = vadd.f32 %v696_v58, %v693_v57 }
 0x34a   : > { %699 = vst.msk [vmem:[#allocation4] sm:$0xff] %vm698_vm10, %v697_v59 }
 0x358   : > { %v724_v62 = vpop.f32.mrf.mxu3 }
 0x359   : > { %v728_v63 = vadd.f32 %v724_v62, %v706_v61 }
 0x35b   : > { %729 = vst.msk [vmem:[#allocation5] sm:$0xff] %vm461_vm5, %v728_v63 }
 0x360   : > { %v726_v0 = vpop.f32.mrf.mxu3 }
 0x361 PF: > { %p912_p8 = scmp.ne.s32.totalorder %s1107_s24, %s1111_s25 }
 0x363   : > { %734 = sbr.rel (%p912_p8) target bundleno = 998 (0x3e6), region = 56 }
 0x368   : > { %v735_v1 = vld [vmem:[#allocation4] sm:$0xff]  ;;  %v1136_v2 = vmov 0   ;;  %v737_v4 = vld [vmem:[#allocation5] sm:$0xff]  ;;  %vm744_vm11 = vcmask 130048  }
 0x369   : > { %1018 = vset.pattern.permute.xlu0 %v1136_v2  ;;  %1019 = vrcp.f32 %v735_v1 }
 0x36f   : > { %v1020_v3 = vpop.eup %1019 }
 0x370   : > { %740 = vperm.xlu0 %1018, %v1020_v3  }
 0x3e2   : > { %v741_v5 = vpop.permute.xlu0 %740 }
 0x3e3   : > { %v743_v6 = vmul.f32 %v741_v5, %v737_v4 }
 0x3e5   : > { %745 = vst.msk [vmem:[%s326_s21] sm:$0xff] %vm744_vm11, %v743_v6 }
 0x3e6 PF: > { %s914_s24 = sshll.u32 %s1115_s26, 1  ;;  %s761_s17 = sshll.u32 %s326_s21, 4  ;;  %s762_s17 = int_to_ptr.vmem [resolvable:$true] %s761_s17 }
 0x3e7   : > { %s757_s15 = sadd.s32 %s1111_s25, %s914_s24  ;;  %s1450_s29 = sand.u32 1, %s1099_s22  }
 0x3e8   : > { %s915_s7 = sshll.u32 %s757_s15, 3  ;;  %s747_s27 = scalar_lea.sflag [#allocation8], %s1450_s29 }
 0x3e9   : > { %s759_s11 = scalar_lea.hbm %s1428_s6, %s915_s7  ;;  %s1041_s21 = scalar_lea.hbm %s1428_s6, 32 }
 0x3ea   : > { %s763_s28 = sshll.u32 %s759_s11, 4  ;;  %s764_s28 = int_to_ptr.hbm [resolvable:$true] %s763_s28 }
 0x3eb   : > { %s1035_s18 = sshra.s32 %s764_s28, 4  ;;  %s1036_s18 = int_to_ptr.hbm [resolvable:$true] %s1035_s18 }
 0x3ec   : > { %s1037_s13 = scalar_lea.hbm %s1036_s18, 8  ;;  %p1042_p12 = scmp.lt.s32.totalorder %s1036_s18, %s1428_s6 }
 0x3ed   : > { %p1038_p9 = scmp.ne.s32.totalorder %s1036_s18, %s1037_s13  ;;  %p1043_p13 = scmp.lt.s32.totalorder %s1041_s21, %s1037_s13 }
 0x3ef   : > { %p1039_p10 = pnand %p1038_p9, %p1234_p6  ;;  %p1044_p0 = por %p1043_p13, %p1042_p12 }
 0x3f1   : > { %p1040_p11 = pneg %p1039_p10 }
 0x3f3   : > { %p1045_p1 = pnand %p1044_p0, %p1040_p11 }
 0x3f5   : > { %1048 = shalt.err (!%p1045_p1)
}
 0x3f6   : > { %921 = dma.vmem_to_hbm [thread:$0]  (%p1234_p6), %s762_s17, 128, %s764_s28, %s747_s27  }
 0x3f7 PF: > { %s1451_s9 = sld [smem:[#allocation10_spill]]  ;;  %p927_p2 = scmp.ge.s32.totalorder %s1131_s30, 2 }
 0x3f9   : > { %p924_p3 = pnand %p927_p2, %p1241_p7 }
 0x3fb   : > { %p925_p4 = pneg %p924_p3 }
 0x3fd   : > { %s775_s23 = sand.u32 1, %s1451_s9  }
 0x3fe   : > { %s776_s16 = scalar_lea.sflag [#allocation8], %s775_s23 }
 0x3ff   : > { %1090 = dma.done.wait (%p925_p4), %s776_s16, 128  }
 0x400   : > { %1092 = vsyncadd (%p925_p4), %s776_s16, 4294967168  ;;  %s19_s30 = sadd.s32 1, %s1131_s30   ;;  %s1453_s24 = sld [smem:[#allocation11_spill]] }
 0x401   : > { %p16_p5 = scmp.ge.s32.totalorder %s19_s30, 10   ;;  %s1454_s23 = sld [smem:[#allocation19_spill]] }
 0x402   : > { %s1455_s12 = sld [smem:[#allocation12_spill]]  ;;  %s1461_s21 = smov %s1099_s22 }
 0x403   : > { %s1456_s25 = sld [smem:[#allocation13_spill]] }
 0x404   : > { %s1457_s26 = sld [smem:[#allocation14_spill]]  ;;  %18 = sbr.rel (!%p16_p5) target bundleno = 6 (0x6), region = 97 }
 0x405   : > { %s1458_s27 = sld [smem:[#allocation15_spill]] }
 0x406   : > { %s1459_s28 = sld [smem:[#allocation16_spill]]  ;;  %s1462_s22 = smov %s1453_s24 }
 0x407   : > { %s1460_s29 = sld [smem:[#allocation18_spill]] }
 0x408   : > { %s1463_s24 = smov %s1455_s12 }
 0x409   :  { %782 = vsyncpa [#allocation8], 1 }
 0x40a   :  { %784 = vsyncpa [#allocation8 + $0x1], 1 }

</bundles_post_ra>
